<compile_context>
chip_gen: v5e
topology: v5e:2x2
jax: 0.10.0
libtpu: 0.0.40
codegen_flags: <defaults>
</compile_context>

<pallas_src>
import functools

import jax
import jax.numpy as jnp
from jax.experimental import pallas as pl
from jax.experimental.pallas import tpu as pltpu

NEG_SLOPE = 0.01  # torch.nn.LeakyReLU default


def _leaky_relu(x):
    return jnp.where(x >= 0, x, NEG_SLOPE * x)


def _round_up(n, m):
    return ((n + m - 1) // m) * m


def pg_mlp_kernel(x_ref, w1_ref, b1_ref, w2_ref, b2_ref, w3_ref, b3_ref, out_ref):
    # Batch-on-lanes: x tile (statesize, TB), weights (out, in), biases (out, 1).
    xb = x_ref[...]
    # fc1 + LeakyReLU
    h1 = jnp.dot(w1_ref[...], xb, preferred_element_type=jnp.float32)
    h1 = _leaky_relu(h1 + b1_ref[...])                       # (8, TB)
    # fc2 + LeakyReLU
    h2 = jnp.dot(w2_ref[...], h1, preferred_element_type=jnp.float32)
    h2 = _leaky_relu(h2 + b2_ref[...])                        # (16, TB)
    # fc3 (no activation)
    h3 = jnp.dot(w3_ref[...], h2, preferred_element_type=jnp.float32)
    out_ref[...] = (h3 + b3_ref[...]).astype(out_ref.dtype)   # (A, TB), lane-dense store


@functools.partial(jax.jit, static_argnames=("batch_tile",))
def pg_forward(x, params, *, batch_tile=4096):
    """x: (B, statesize) float32.  params: PyTorch-layout (out,in) weights, (out,) biases."""
    w1, b1 = params["w1"], params["b1"]   # (8, S),  (8,)
    w2, b2 = params["w2"], params["b2"]   # (16, 8), (16,)
    w3, b3 = params["w3"], params["b3"]   # (A, 16), (A,)
    B, S = x.shape
    A = w3.shape[0]

    # Batch tile: multiple of 128 lanes; large tiles amortise the ~0.35us
    # per-grid-step overhead, but never bigger than the (padded) batch.
    tb = min(_round_up(batch_tile, 128), _round_up(B, 128))
    b_pad = _round_up(B, tb)
    grid = (b_pad // tb,)

    # Wrapper-side layout plumbing (fused by XLA under jit): pad the batch and
    # put it on the last (lane) axis.
    xT = jnp.pad(x, ((0, b_pad - B), (0, 0))).T               # (S, b_pad)
    b1c = b1.reshape(-1, 1)
    b2c = b2.reshape(-1, 1)
    b3c = b3.reshape(-1, 1)

    # Weights/biases: constant block index every grid step -> one-time DMA,
    # stay resident in VMEM for the whole call.
    const = lambda a: pl.BlockSpec(a.shape, lambda i: (0,) * a.ndim)

    flops = 2 * B * (S * 8 + 8 * 16 + 16 * A)
    bytes_accessed = 4 * (b_pad * (S + A) + w1.size + w2.size + w3.size
                          + b1.size + b2.size + b3.size)

    outT = pl.pallas_call(
        pg_mlp_kernel,
        out_shape=jax.ShapeDtypeStruct((A, b_pad), jnp.float32),
        grid=grid,
        in_specs=[
            pl.BlockSpec((S, tb), lambda i: (0, i)),          # x: tile the batch (lane) axis
            const(w1), const(b1c),
            const(w2), const(b2c),
            const(w3), const(b3c),
        ],
        out_specs=pl.BlockSpec((A, tb), lambda i: (0, i)),
        compiler_params=pltpu.CompilerParams(
            dimension_semantics=("parallel",),                # shard batch tiles across TCs (v7x)
        ),
        cost_estimate=pl.CostEstimate(
            flops=flops, transcendentals=0, bytes_accessed=bytes_accessed),
    )(xT, w1, b1c, w2, b2c, w3, b3c)

    # Back to (B, A); padded batch columns are dropped (slice before transpose).
    return outT[:, :B].T


def init_params(key, statesize, actionsize):
    """PyTorch-style init: U(-1/sqrt(fan_in), 1/sqrt(fan_in)); weights stored (out, in)."""
    def linear(k, fan_in, fan_out):
        kw, kb = jax.random.split(k)
        bound = 1.0 / jnp.sqrt(jnp.float32(fan_in))
        w = jax.random.uniform(kw, (fan_out, fan_in), jnp.float32, -bound, bound)
        b = jax.random.uniform(kb, (fan_out,), jnp.float32, -bound, bound)
        return w, b

    k1, k2, k3 = jax.random.split(key, 3)
    w1, b1 = linear(k1, statesize, 8)
    w2, b2 = linear(k2, 8, 16)
    w3, b3 = linear(k3, 16, actionsize)
    return {"w1": w1, "b1": b1, "w2": w2, "b2": b2, "w3": w3, "b3": b3}


def pg_reference(x, p):
    """Plain-JAX reference (PyTorch Linear convention: x @ W.T + b)."""
    h = _leaky_relu(x @ p["w1"].T + p["b1"])
    h = _leaky_relu(h @ p["w2"].T + p["b2"])
    return h @ p["w3"].T + p["b3"]


if __name__ == "__main__":
    key = jax.random.PRNGKey(0)
    kx, kp = jax.random.split(key)

    batch, statesize, actionsize = 4, 6, 3
    x = jax.random.normal(kx, (batch, statesize), jnp.float32)
    params = init_params(kp, statesize, actionsize)

    out = jax.block_until_ready(pg_forward(x, params))
    ref = pg_reference(x, params)
    assert out.shape == (batch, actionsize)
    assert jnp.allclose(out, ref, atol=1e-5, rtol=1e-5), "mismatch vs reference (small batch)"

    # Exercise the multi-tile grid + batch-padding path (B not a tile multiple).
    x2 = jax.random.normal(kx, (300, statesize), jnp.float32)
    out2 = jax.block_until_ready(pg_forward(x2, params, batch_tile=128))
    ref2 = pg_reference(x2, params)
    assert out2.shape == (300, actionsize)
    assert jnp.allclose(out2, ref2, atol=1e-5, rtol=1e-5), "mismatch vs reference (tiled batch)"

    print("KERNEL_OK")
</pallas_src>

<mosaic_0001>
module attributes {stable_mosaic.version = 11 : i64} {
  func.func @pg_mlp_kernel(%arg0: i32, %arg1: memref<6x128xf32, #tpu.memory_space<vmem>>, %arg2: memref<8x6xf32, #tpu.memory_space<vmem>>, %arg3: memref<8x1xf32, #tpu.memory_space<vmem>>, %arg4: memref<16x8xf32, #tpu.memory_space<vmem>>, %arg5: memref<16x1xf32, #tpu.memory_space<vmem>>, %arg6: memref<3x16xf32, #tpu.memory_space<vmem>>, %arg7: memref<3x1xf32, #tpu.memory_space<vmem>>, %arg8: memref<3x128xf32, #tpu.memory_space<vmem>>) attributes {dimension_semantics = [#tpu.dimension_semantics<parallel>], iteration_bounds = array<i64: 1>, scalar_prefetch = 0 : i64, scratch_operands = 0 : i64, tpu.core_type = #tpu.core_type<tc>, window_params = [{transform_indices = @transform_0, window_bounds = array<i64: 6, 128>}, {pipeline_mode = #tpu.pipeline_mode<synchronous>, transform_indices = @transform_1, window_bounds = array<i64: 8, 6>}, {pipeline_mode = #tpu.pipeline_mode<synchronous>, transform_indices = @transform_2, window_bounds = array<i64: 8, 1>}, {pipeline_mode = #tpu.pipeline_mode<synchronous>, transform_indices = @transform_3, window_bounds = array<i64: 16, 8>}, {pipeline_mode = #tpu.pipeline_mode<synchronous>, transform_indices = @transform_4, window_bounds = array<i64: 16, 1>}, {pipeline_mode = #tpu.pipeline_mode<synchronous>, transform_indices = @transform_5, window_bounds = array<i64: 3, 16>}, {pipeline_mode = #tpu.pipeline_mode<synchronous>, transform_indices = @transform_6, window_bounds = array<i64: 3, 1>}, {transform_indices = @transform_7, window_bounds = array<i64: 3, 128>}]} {
    %c0 = arith.constant 0 : index
    %c0_0 = arith.constant 0 : index
    %0 = vector.load %arg1[%c0, %c0_0] : memref<6x128xf32, #tpu.memory_space<vmem>>, vector<6x128xf32>
    %c0_1 = arith.constant 0 : index
    %c0_2 = arith.constant 0 : index
    %1 = vector.load %arg2[%c0_1, %c0_2] : memref<8x6xf32, #tpu.memory_space<vmem>>, vector<8x6xf32>
    %cst = arith.constant dense<0.000000e+00> : vector<8x128xf32>
    %2 = tpu.matmul %1, %0, %cst {dimension_numbers = #tpu.dot_dimension_numbers<[1], [0], [0], [1], [0, 0, 1, 1], [], []>} : vector<8x6xf32>, vector<6x128xf32>, vector<8x128xf32> -> vector<8x128xf32>
    %c0_3 = arith.constant 0 : index
    %c0_4 = arith.constant 0 : index
    %3 = vector.load %arg3[%c0_3, %c0_4] : memref<8x1xf32, #tpu.memory_space<vmem>>, vector<8x1xf32>
    %4 = vector.broadcast %3 : vector<8x1xf32> to vector<8x128xf32>
    %5 = arith.addf %2, %4 : vector<8x128xf32>
    %cst_5 = arith.constant 0.000000e+00 : f32
    %6 = vector.broadcast %cst_5 : f32 to vector<8x128xf32>
    %7 = arith.cmpf oge, %5, %6 : vector<8x128xf32>
    %cst_6 = arith.constant 0.00999999977 : f32
    %8 = vector.broadcast %cst_6 : f32 to vector<8x128xf32>
    %9 = arith.mulf %8, %5 : vector<8x128xf32>
    %10 = arith.select %7, %5, %9 : vector<8x128xi1>, vector<8x128xf32>
    %c0_7 = arith.constant 0 : index
    %c0_8 = arith.constant 0 : index
    %11 = vector.load %arg4[%c0_7, %c0_8] : memref<16x8xf32, #tpu.memory_space<vmem>>, vector<16x8xf32>
    %cst_9 = arith.constant dense<0.000000e+00> : vector<16x128xf32>
    %12 = tpu.matmul %11, %10, %cst_9 {dimension_numbers = #tpu.dot_dimension_numbers<[1], [0], [0], [1], [0, 0, 1, 1], [], []>} : vector<16x8xf32>, vector<8x128xf32>, vector<16x128xf32> -> vector<16x128xf32>
    %c0_10 = arith.constant 0 : index
    %c0_11 = arith.constant 0 : index
    %13 = vector.load %arg5[%c0_10, %c0_11] : memref<16x1xf32, #tpu.memory_space<vmem>>, vector<16x1xf32>
    %14 = vector.broadcast %13 : vector<16x1xf32> to vector<16x128xf32>
    %15 = arith.addf %12, %14 : vector<16x128xf32>
    %cst_12 = arith.constant 0.000000e+00 : f32
    %16 = vector.broadcast %cst_12 : f32 to vector<16x128xf32>
    %17 = arith.cmpf oge, %15, %16 : vector<16x128xf32>
    %cst_13 = arith.constant 0.00999999977 : f32
    %18 = vector.broadcast %cst_13 : f32 to vector<16x128xf32>
    %19 = arith.mulf %18, %15 : vector<16x128xf32>
    %20 = arith.select %17, %15, %19 : vector<16x128xi1>, vector<16x128xf32>
    %c0_14 = arith.constant 0 : index
    %c0_15 = arith.constant 0 : index
    %21 = vector.load %arg6[%c0_14, %c0_15] : memref<3x16xf32, #tpu.memory_space<vmem>>, vector<3x16xf32>
    %cst_16 = arith.constant dense<0.000000e+00> : vector<3x128xf32>
    %22 = tpu.matmul %21, %20, %cst_16 {dimension_numbers = #tpu.dot_dimension_numbers<[1], [0], [0], [1], [0, 0, 1, 1], [], []>} : vector<3x16xf32>, vector<16x128xf32>, vector<3x128xf32> -> vector<3x128xf32>
    %c0_17 = arith.constant 0 : index
    %c0_18 = arith.constant 0 : index
    %23 = vector.load %arg7[%c0_17, %c0_18] : memref<3x1xf32, #tpu.memory_space<vmem>>, vector<3x1xf32>
    %24 = vector.broadcast %23 : vector<3x1xf32> to vector<3x128xf32>
    %25 = arith.addf %22, %24 : vector<3x128xf32>
    %c0_19 = arith.constant 0 : index
    %c0_20 = arith.constant 0 : index
    %26 = vector.load %arg8[%c0_19, %c0_20] : memref<3x128xf32, #tpu.memory_space<vmem>>, vector<3x128xf32>
    tpu.vector_store %arg8[%c0_19, %c0_20], %25 {strides = array<i32>} : memref<3x128xf32, #tpu.memory_space<vmem>>, vector<3x128xf32>,
    return
  }
  func.func @transform_0(%arg0: i32) -> (i32, i32) {
    %c0_i32 = arith.constant 0 : i32
    %c0_i32_0 = arith.constant 0 : i32
    return %c0_i32, %arg0 : i32, i32
  }
  func.func @transform_1(%arg0: i32) -> (i32, i32) {
    %c0_i32 = arith.constant 0 : i32
    %c0_i32_0 = arith.constant 0 : i32
    %c0_i32_1 = arith.constant 0 : i32
    return %c0_i32, %c0_i32_0 : i32, i32
  }
  func.func @transform_2(%arg0: i32) -> (i32, i32) {
    %c0_i32 = arith.constant 0 : i32
    %c0_i32_0 = arith.constant 0 : i32
    %c0_i32_1 = arith.constant 0 : i32
    return %c0_i32, %c0_i32_0 : i32, i32
  }
  func.func @transform_3(%arg0: i32) -> (i32, i32) {
    %c0_i32 = arith.constant 0 : i32
    %c0_i32_0 = arith.constant 0 : i32
    %c0_i32_1 = arith.constant 0 : i32
    return %c0_i32, %c0_i32_0 : i32, i32
  }
  func.func @transform_4(%arg0: i32) -> (i32, i32) {
    %c0_i32 = arith.constant 0 : i32
    %c0_i32_0 = arith.constant 0 : i32
    %c0_i32_1 = arith.constant 0 : i32
    return %c0_i32, %c0_i32_0 : i32, i32
  }
  func.func @transform_5(%arg0: i32) -> (i32, i32) {
    %c0_i32 = arith.constant 0 : i32
    %c0_i32_0 = arith.constant 0 : i32
    %c0_i32_1 = arith.constant 0 : i32
    return %c0_i32, %c0_i32_0 : i32, i32
  }
  func.func @transform_6(%arg0: i32) -> (i32, i32) {
    %c0_i32 = arith.constant 0 : i32
    %c0_i32_0 = arith.constant 0 : i32
    %c0_i32_1 = arith.constant 0 : i32
    return %c0_i32, %c0_i32_0 : i32, i32
  }
  func.func @transform_7(%arg0: i32) -> (i32, i32) {
    %c0_i32 = arith.constant 0 : i32
    %c0_i32_0 = arith.constant 0 : i32
    return %c0_i32, %arg0 : i32, i32
  }
}

</mosaic_0001>

<bundles_post_ra>
// kernel: pg_forward.1
= control target key start
LH: loop header
LB: loop body
LE: loop exit
PB: predicated region body
PF: predicated region fallthrough
CT: control target
= control target key end

     0   :  { %vm38_vm0 = vcmask 1045504   ;;  %vm34_vm1 = vcmask 48128   ;;  %v160_v2 = vmov 0   ;;  %vm79_vm3 = vcmask 64512   ;;  %s231_s0 = inlined_call_operand.vmem [shape: f32[6,128], index: 0, kind: input, shape index: {}]   ;;  %s232_s1 = inlined_call_operand.vmem [shape: f32[8,6], index: 1, kind: input, shape index: {}]   ;;  %s233_s2 = inlined_call_operand.vmem [shape: f32[8,1], index: 2, kind: input, shape index: {}]   ;;  %s234_s4 = inlined_call_operand.vmem [shape: f32[16,1], index: 4, kind: input, shape index: {}]   ;;  %s235_s6 = inlined_call_operand.vmem [shape: f32[3,1], index: 6, kind: input, shape index: {}]   ;;  %s236_s3 = inlined_call_operand.vmem [shape: f32[16,8], index: 3, kind: input, shape index: {}]   ;;  %s237_s5 = inlined_call_operand.vmem [shape: f32[3,16], index: 5, kind: input, shape index: {}]   ;;  %s238_s7 = inlined_call_operand.vmem [shape: f32[3,128], index: 7, kind: output, shape index: {}]  }
   0x1   :  { %v26_v0 = vld [vmem:[%s231_s0] sm:$0x3f]  ;;  %158 = vset.pattern.permute.xlu0 %v160_v2  ;;  %159 = vset.pattern.permute.xlu1 %v160_v2  ;;  %v68_v4 = vld [vmem:[%s234_s4 + $0x8] sm:$0xff]  ;;  %vm122_vm6 = vcmask 130048  }
   0x2   :  { %v27_v1 = vld [vmem:[%s232_s1] sm:$0xff]  ;;  %151 = vmatpush.msk.msra.mxu0 %vm38_vm0, %v26_v0  ;;  %v66_v11 = vld [vmem:[%s236_s3 + $0x8] sm:$0xff] }
   0x3   :  { %v28_v3 = vld [vmem:[%s233_s2] sm:$0xff]  ;;  %152 = vmatmul.msk.f32.vlgmr.msra.gmra.mxu0 %vm34_vm1, %v27_v1 }
   0x4   :  { %31 = vperm.xlu0 %158, %v28_v3   ;;  %v67_v5 = vld [vmem:[%s234_s4] sm:$0xff] }
   0x5   :  { %71 = vperm.xlu1 %159, %v67_v5   ;;  %v116_v6 = vld [vmem:[%s235_s6] sm:$0x7] }
   0x6   :  { %v65_v12 = vld [vmem:[%s236_s3] sm:$0xff] }
   0x7   :  { %v115_v23 = vld [vmem:[%s237_s5] sm:$0x7] }
   0xc   :  { %76 = vperm.xlu0 %158, %v68_v4  }
   0xd   :  { %119 = vperm.xlu1 %159, %v116_v6  }
  0x76   :  { %v32_v7 = vpop.permute.xlu0 %31 }
  0x77   :  { %v72_v15 = vpop.permute.xlu1 %71 }
  0x7e   :  { %v77_v17 = vpop.permute.xlu0 %76 }
  0x7f   :  { %v120_v25 = vpop.permute.xlu1 %119 }
  0x80   :  { %v59_v8 = vpop.f32.mrf.mxu0 }
  0x81   :  { %v60_v9 = vadd.f32 %v59_v8, %v32_v7 }
  0x83   :  { %vm62_vm2 = vcmp.ge.f32.partialorder %v60_v9, 0.0  ;;  %v63_v10 = vmul.f32 0.01, %v60_v9 }
  0x85   :  { %v64_v13 = vsel %vm62_vm2, %v60_v9, %v63_v10 }
  0x86   :  { %101 = vmatpush.msra.mxu1 %v64_v13  ;;  %156 = vmatpush.msra.mxu3 %v64_v13 }
  0x87   :  { %154 = vmatmul.msk.f32.vlgmr.msra.gmra.mxu3 %vm79_vm3, %v66_v11  ;;  %153 = vmatmul.msk.f32.vlgmr.msra.gmra.mxu1 %vm79_vm3, %v65_v12 }
 0x104   :  { %v103_v14 = vpop.f32.mrf.mxu1 }
 0x105   :  { %v104_v16 = vadd.f32 %v103_v14, %v72_v15 }
 0x107   :  { %v111_v21 = vmul.f32 0.01, %v104_v16  ;;  %vm109_vm5 = vcmp.ge.f32.partialorder %v104_v16, 0.0 }
 0x109   :  { %v113_v24 = vsel %vm109_vm5, %v104_v16, %v111_v21 }
 0x10a   :  { %v106_v18 = vpop.f32.mrf.mxu3 }
 0x10b   :  { %v107_v19 = vadd.f32 %v106_v18, %v77_v17 }
 0x10d   :  { %vm110_vm4 = vcmp.ge.f32.partialorder %v107_v19, 0.0  ;;  %v112_v20 = vmul.f32 0.01, %v107_v19 }
 0x10f   :  { %v114_v22 = vsel %vm110_vm4, %v107_v19, %v112_v20 }
 0x110   :  { %140 = vmatpush.msra.mxu2 %v114_v22 }
 0x112   :  { %141 = vmatpush.msra.mxu2 %v113_v24 }
 0x113   :  { %155 = vmatmul.msk.f32.vlgmr.msra.gmra.mxu2 %vm122_vm6, %v115_v23 }
 0x196   :  { %v143_v26 = vpop.f32.mrf.mxu2 }
 0x197   :  { %v144_v27 = vadd.f32 %v143_v26, %v120_v25 }
 0x199   :  { %146 = vst [vmem:[%s238_s7] sm:$0x7] %v144_v27 }

</bundles_post_ra>
